<compile_context>
chip_gen: v5e
topology: v5e:2x2
jax: 0.10.0
libtpu: 0.0.40
codegen_flags: <defaults>
</compile_context>

<pallas_src>
import functools

import jax
import jax.numpy as jnp
from jax.experimental import pallas as pl
from jax.experimental.pallas import tpu as pltpu


_MIN_SPLIT_BYTES = 4 << 20   # below this, extra grid steps just add per-step overhead


def _round_up(x, m):
    return (x + m - 1) // m * m


def _cdiv(a, b):
    return (a + b - 1) // b


def _vmem_budget():
    """(tile_cap_bytes, scoped_vmem_limit_bytes, physical_vmem_bytes), generation-aware."""
    cap = None
    try:
        info_fn = getattr(pltpu, "get_tpu_info", None)
        if info_fn is not None:
            cap = getattr(info_fn(), "vmem_capacity_bytes", None)
    except Exception:
        cap = None
    if not cap:
        cap = 64 << 20                      # unknown -> be conservative (v7x-like)
    if cap >= (100 << 20):                  # v5e / v6e: 128 MiB physical VMEM
        return 20 << 20, 64 << 20, cap
    return 8 << 20, 32 << 20, cap           # v7x-class: 64 MiB physical VMEM


def _classify_kernel(x_ref, w_ref, o_ref, *, inv_hw):
    """One batch tile per grid step.

    x_ref: (BN, C1, HW)              activations, H*W on the lane axis
    w_ref: (C1, C2p)                 1x1 conv weight (bias-free), resident across steps
    o_ref: (BN, C2p) or (BN, 1, C2p) pooled + projected logits
    """
    # Upcast fused into the reduce: no f32 copy of the whole tile in VMEM/vregs.
    pooled = jnp.sum(x_ref[...], axis=-1, dtype=jnp.float32) * inv_hw     # (BN, C1)
    y = jnp.dot(pooled.astype(w_ref.dtype), w_ref[...],
                preferred_element_type=jnp.float32)                       # (BN, C2p)
    o_ref[...] = y.reshape(o_ref.shape).astype(o_ref.dtype)


def _classify_hw_partial_kernel(x_ref, w_ref, o_ref, *, hw_total, hw_chunk):
    """One H*W chunk per grid step (batch-1 / single-tile case): partial logits."""
    h = pl.program_id(0)
    lane = jax.lax.broadcasted_iota(jnp.int32, (1, 1, hw_chunk), 2)
    valid = lane < (hw_total - h * hw_chunk)          # masks the padded tail chunk
    x = jnp.where(valid, x_ref[...], jnp.array(0, x_ref.dtype))
    psum = jnp.sum(x, axis=-1, dtype=jnp.float32)                          # (N, C1)
    y = jnp.dot(psum.astype(w_ref.dtype), w_ref[...],
                preferred_element_type=jnp.float32)                        # (N, C2p)
    o_ref[...] = y.reshape(o_ref.shape)


def classify_forward(x_nchw, w_oihw, *, _force_hw_split=False):
    """Fused Classify.forward for a single NCHW tensor. Returns (N, C2) logits."""
    N, C1, H, W = x_nchw.shape
    C2, C1w, KH, KW = w_oihw.shape
    assert C1w == C1 and KH == 1 and KW == 1, "default Classify path: k=1, s=1, p=0, g=1"
    HW = H * W
    dtype = x_nchw.dtype
    itemsize = jnp.dtype(dtype).itemsize

    # Free reshapes only (NCHW -> (N, C1, HW) puts H*W on the lane axis).
    x3 = x_nchw.reshape(N, C1, HW)
    C2p = _round_up(C2, 128)                       # lane-dense output / aligned MXU N-dim
    w2 = jnp.transpose(w_oihw.reshape(C2, C1), (1, 0)).astype(dtype)       # (C1, C2)
    if C2p != C2:
        w2 = jnp.pad(w2, ((0, 0), (0, C2p - C2)))

    # Layout-accurate (lane / sublane padded) VMEM footprint per image.
    sub = max(8, 32 // itemsize)                   # 8 f32 / 16 bf16 / 32 int8 sublanes
    per_image_bytes = _round_up(C1, sub) * _round_up(HW, 128) * itemsize
    total_bytes = N * per_image_bytes

    tile_cap, vmem_limit, vmem_phys = _vmem_budget()

    # Batch tile: biggest that fits the cap; only force >=2 grid steps (two v7x TCs)
    # when the activation is big enough to amortize the per-step overhead.
    BN = max(1, min(N, tile_cap // max(1, per_image_bytes)))
    if N >= 2 and total_bytes >= _MIN_SPLIT_BYTES:
        BN = min(BN, _cdiv(N, 2))
    if BN < N and BN % 8 and BN > 8:
        BN = (BN // 8) * 8                         # keep 2-D output block (8,128)-legal
    grid_n = _cdiv(N, BN)

    # Batch-1 (or otherwise single-step) with a large activation: split H*W instead,
    # so both TensorCores still get work and the per-step tile stays under the cap.
    use_hw_split = _force_hw_split or (grid_n < 2 and total_bytes >= _MIN_SPLIT_BYTES)
    if use_hw_split:
        n_chunks = max(2, _cdiv(per_image_bytes, tile_cap))
        hw_chunk = _round_up(_cdiv(HW, n_chunks), 128)
        n_chunks = _cdiv(HW, hw_chunk)
        if n_chunks >= 2:
            need = 2 * N * _round_up(C1, sub) * hw_chunk * itemsize + (4 << 20)
            vmem = min(max(vmem_limit, need), vmem_phys - (4 << 20))
            partial = pl.pallas_call(
                functools.partial(_classify_hw_partial_kernel,
                                  hw_total=HW, hw_chunk=hw_chunk),
                out_shape=jax.ShapeDtypeStruct((n_chunks, N, C2p), jnp.float32),
                grid_spec=pltpu.PrefetchScalarGridSpec(
                    num_scalar_prefetch=0,
                    grid=(n_chunks,),
                    in_specs=[
                        pl.BlockSpec((N, C1, hw_chunk), lambda h: (0, 0, h)),
                        pl.BlockSpec((C1, C2p), lambda h: (0, 0)),
                    ],
                    out_specs=pl.BlockSpec((1, N, C2p), lambda h: (h, 0, 0)),
                ),
                compiler_params=pltpu.CompilerParams(
                    dimension_semantics=("parallel",),
                    vmem_limit_bytes=vmem),
            )(x3, w2)
            logits = jnp.sum(partial, axis=0) * (1.0 / HW)
            return logits[:, :C2].astype(dtype)

    # Main path: one batch tile per grid step, pool + 1x1 conv fused, cdiv grid.
    if BN == N or BN % 8 == 0:
        out_shape = jax.ShapeDtypeStruct((N, C2p), dtype)
        out_spec = pl.BlockSpec((BN, C2p), lambda n: (n, 0))
        out_is_3d = False
    else:
        # Rare fallback (huge images force BN < 8 < N): a size-1 sublane dim keeps the
        # (8,128) block rule satisfied; the output is tiny so this costs ~nothing.
        out_shape = jax.ShapeDtypeStruct((N, 1, C2p), dtype)
        out_spec = pl.BlockSpec((BN, 1, C2p), lambda n: (n, 0, 0))
        out_is_3d = True

    vmem = min(max(vmem_limit, 2 * BN * per_image_bytes + (4 << 20)),
               vmem_phys - (4 << 20))

    out = pl.pallas_call(
        functools.partial(_classify_kernel, inv_hw=1.0 / HW),
        out_shape=out_shape,
        grid_spec=pltpu.PrefetchScalarGridSpec(
            num_scalar_prefetch=0,
            grid=(grid_n,),
            in_specs=[
                pl.BlockSpec((BN, C1, HW), lambda n: (n, 0, 0)),
                pl.BlockSpec((C1, C2p), lambda n: (0, 0)),
            ],
            out_specs=out_spec,
        ),
        compiler_params=pltpu.CompilerParams(
            dimension_semantics=("parallel",),
            vmem_limit_bytes=vmem),
    )(x3, w2)

    if out_is_3d:
        out = out.reshape(N, C2p)
    return out[:, :C2] if C2p != C2 else out


def _reference(x_nchw, w_oihw):
    z = jnp.mean(x_nchw, axis=(2, 3))                               # AdaptiveAvgPool2d(1)
    w2 = w_oihw.reshape(w_oihw.shape[0], w_oihw.shape[1])           # (C2, C1)
    return z @ w2.T                                                 # 1x1 conv + flatten


if __name__ == "__main__":
    # Classify(c1=4, c2=8) defaults: k=1, s=1, p=autopad(1)=0, g=1, bias=False.
    N, C1, H, W = 2, 4, 16, 16
    C2 = 8

    key = jax.random.PRNGKey(0)
    kx, kw, kx1 = jax.random.split(key, 3)
    x = jax.random.normal(kx, (N, C1, H, W), dtype=jnp.float32)
    w = jax.random.normal(kw, (C2, C1, 1, 1), dtype=jnp.float32) * 0.1

    out = jax.block_until_ready(classify_forward(x, w))
    ref = _reference(x, w)
    assert out.shape == (N, C2), out.shape
    assert jnp.allclose(out, ref, atol=1e-4, rtol=1e-4), "mismatch (main path)"

    # Also exercise the batch-1 H*W-split path (used for large single-image inputs).
    x1 = jax.random.normal(kx1, (1, C1, H, W), dtype=jnp.float32)
    out1 = jax.block_until_ready(classify_forward(x1, w, _force_hw_split=True))
    ref1 = _reference(x1, w)
    assert out1.shape == (1, C2), out1.shape
    assert jnp.allclose(out1, ref1, atol=1e-4, rtol=1e-4), "mismatch (HW-split path)"

    # TODO(synk): list-of-tensors input (per-tensor pooling + channel concat) and the
    # k>1 / groups>1 Conv2d variants of Classify are not implemented; the standard
    # single-tensor head (k=1, s=1, g=1, no bias) path is.
    print("KERNEL_OK")
</pallas_src>

<mosaic_0001>
module attributes {stable_mosaic.version = 11 : i64} {
  func.func @_classify_kernel(%arg0: i32, %arg1: memref<2x4x256xf32, #tpu.memory_space<vmem>>, %arg2: memref<4x128xf32, #tpu.memory_space<vmem>>, %arg3: memref<2x128xf32, #tpu.memory_space<vmem>>) attributes {dimension_semantics = [#tpu.dimension_semantics<parallel>], iteration_bounds = array<i64: 1>, scalar_prefetch = 0 : i64, scratch_operands = 0 : i64, tpu.core_type = #tpu.core_type<tc>, window_params = [{transform_indices = @transform_0, window_bounds = array<i64: 2, 4, 256>}, {pipeline_mode = #tpu.pipeline_mode<synchronous>, transform_indices = @transform_1, window_bounds = array<i64: 4, 128>}, {transform_indices = @transform_2, window_bounds = array<i64: 2, 128>}]} {
    %c0 = arith.constant 0 : index
    %c0_0 = arith.constant 0 : index
    %c0_1 = arith.constant 0 : index
    %0 = vector.load %arg1[%c0, %c0_0, %c0_1] : memref<2x4x256xf32, #tpu.memory_space<vmem>>, vector<2x4x256xf32>
    %cst = arith.constant dense<0.000000e+00> : vector<2x4xf32>
    %1 = vector.multi_reduction <add>, %0, %cst [2] : vector<2x4x256xf32> to vector<2x4xf32>
    %cst_2 = arith.constant 3.906250e-03 : f32
    %2 = vector.broadcast %cst_2 : f32 to vector<2x4xf32>
    %3 = arith.mulf %1, %2 : vector<2x4xf32>
    %c0_3 = arith.constant 0 : index
    %c0_4 = arith.constant 0 : index
    %4 = vector.load %arg2[%c0_3, %c0_4] : memref<4x128xf32, #tpu.memory_space<vmem>>, vector<4x128xf32>
    %cst_5 = arith.constant dense<0.000000e+00> : vector<2x128xf32>
    %5 = tpu.matmul %3, %4, %cst_5 {dimension_numbers = #tpu.dot_dimension_numbers<[1], [0], [0], [1], [0, 0, 1, 1], [], []>} : vector<2x4xf32>, vector<4x128xf32>, vector<2x128xf32> -> vector<2x128xf32>
    %c0_6 = arith.constant 0 : index
    %c0_7 = arith.constant 0 : index
    %6 = vector.load %arg3[%c0_6, %c0_7] : memref<2x128xf32, #tpu.memory_space<vmem>>, vector<2x128xf32>
    tpu.vector_store %arg3[%c0_6, %c0_7], %5 {strides = array<i32>} : memref<2x128xf32, #tpu.memory_space<vmem>>, vector<2x128xf32>,
    return
  }
  func.func @transform_0(%arg0: i32) -> (i32, i32, i32) {
    %c0_i32 = arith.constant 0 : i32
    %c0_i32_0 = arith.constant 0 : i32
    %c0_i32_1 = arith.constant 0 : i32
    return %arg0, %c0_i32, %c0_i32_0 : i32, i32, i32
  }
  func.func @transform_1(%arg0: i32) -> (i32, i32) {
    %c0_i32 = arith.constant 0 : i32
    %c0_i32_0 = arith.constant 0 : i32
    %c0_i32_1 = arith.constant 0 : i32
    return %c0_i32, %c0_i32_0 : i32, i32
  }
  func.func @transform_2(%arg0: i32) -> (i32, i32) {
    %c0_i32 = arith.constant 0 : i32
    %c0_i32_0 = arith.constant 0 : i32
    return %arg0, %c0_i32 : i32, i32
  }
}

</mosaic_0001>

<bundles_post_ra>
// kernel: tpu_custom_call.1
= control target key start
LH: loop header
LB: loop body
LE: loop exit
PB: predicated region body
PF: predicated region fallthrough
CT: control target
= control target key end

     0   :  { %7 = vsyncpa [#allocation3], 0  ;;  %s238_s0 = inlined_call_operand.hbm [shape: f32[2,4,256], index: 0, kind: input, shape index: {}]   ;;  %s239_s1 = inlined_call_operand.hbm [shape: f32[4,128], index: 1, kind: input, shape index: {}]   ;;  %s240_s2 = inlined_call_operand.hbm [shape: f32[2,128], index: 2, kind: output, shape index: {}]  }
   0x1   :  { %8 = vsyncpa [#allocation6], 0 }
   0x2   :  { %9 = vsyncpa [#allocation4], 0  ;;  %s14_s11 = sshll.u32 %s238_s0, 4  ;;  %s209_s12 = smov [#allocation2]   ;;  %s15_s11 = int_to_ptr.hbm [resolvable:$true] %s14_s11 }
   0x3   :  { %s16_s13 = sshll.u32 %s209_s12, 4  ;;  %s28_s16 = sshll.u32 %s239_s1, 4  ;;  %s17_s13 = int_to_ptr.vmem [resolvable:$true] %s16_s13  ;;  %s29_s16 = int_to_ptr.hbm [resolvable:$true] %s28_s16 }
   0x4   :  { %s210_s17 = smov 128   ;;  %s211_s18 = smov 8  }
   0x5   :  { %22 = dma.hbm_to_vmem [thread:$0]  %s15_s11, 256, %s17_s13, [#allocation3], %s210_s17, %s210_s17, %s211_s18  }
   0x6   :  { %s212_s19 = smov [#allocation5]  }
   0x7   :  { %s30_s20 = sshll.u32 %s212_s19, 4  ;;  %s31_s20 = int_to_ptr.vmem [resolvable:$true] %s30_s20 }
   0x8   :  { %33 = dma.hbm_to_vmem [thread:$0]  %s29_s16, 64, %s31_s20, [#allocation6]  }
   0x9   :  { %203 = dma.done.wait [#allocation3], 256  }
   0xa   :  { %204 = vsyncadd [#allocation3], 4294967040 }
   0xb   :  { %205 = dma.done.wait [#allocation6], 64  }
   0xc   :  { %206 = vsyncadd [#allocation6], 4294967232  ;;  %v42_v0 = vld [vmem:[#allocation2] sm:$0xff]  ;;  %v43_v1 = vld [vmem:[#allocation2 + $0x8] sm:$0xff]  ;;  %vm57_vm0 = vcmask 1043456   ;;  %v73_v14 = vlaneseq  ;;  %vm77_vm1 = vcmask 1041409  }
   0xd   :  { %46 = vst [vmem:[#allocation1] ss:$2 sm:$0xff] %v42_v0  ;;  %v70_v12 = vld [vmem:[#allocation5] sm:$0xf]  ;;  %vm79_vm2 = vcmask 31744   ;;  %s213_s0 = smov [#allocation7]  }
   0xe   :  { %50 = vst [vmem:[#allocation1 + $0x10] ss:$2 sm:$0xff] %v43_v1  ;;  %124 = vmatpush.msk.msra.mxu0 %vm57_vm0, %v70_v12  ;;  %v74_v15 = vand.u32 127, %v73_v14  ;;  %s111_s1 = sshll.u32 %s213_s0, 4  ;;  %s113_s23 = sshll.u32 %s240_s2, 4  ;;  %s112_s1 = int_to_ptr.vmem [resolvable:$true] %s111_s1  ;;  %s114_s23 = int_to_ptr.hbm [resolvable:$true] %s113_s23 }
  0x14   :  { %v47_v2 = vld.sshfl [vmem:[#allocation1] sm:$0xff pattern:$0x75316420]  ;;  %v48_v3 = vld.sshfl [vmem:[#allocation1 + $0x8] sm:$0xff pattern:$0x75316420] }
  0x15   :  { %v58_v4 = vsel %vm57_vm0, %v47_v2, 0.0  ;;  %v59_v5 = vsel %vm57_vm0, %v48_v3, 0.0  ;;  %v51_v7 = vld.sshfl [vmem:[#allocation1 + $0x10] sm:$0xff pattern:$0x75316420] }
  0x16   :  { %v60_v6 = vadd.f32 %v59_v5, %v58_v4  ;;  %v52_v8 = vld.sshfl [vmem:[#allocation1 + $0x18] sm:$0xff pattern:$0x75316420]  ;;  %v63_v9 = vsel %vm57_vm0, %v51_v7, 0.0 }
  0x17   :  { %v64_v10 = vsel %vm57_vm0, %v52_v8, 0.0 }
  0x18   :  { %61 = vadd.xlane.f32.xlu0 %v60_v6  ;;  %v65_v11 = vadd.f32 %v64_v10, %v63_v9 }
  0x20   :  { %66 = vadd.xlane.f32.xlu0 %v65_v11 }
  0x8b   :  { %v62_v13 = vpop.xlane.xlu0 %61 }
  0x8c   :  { %v68_v16 = vmul.f32 0.00390625, %v62_v13 }
  0x8e   :  { %v75_v19 = vperm.slane %v68_v16, %v74_v15 }
  0x93   :  { %v67_v17 = vpop.xlane.xlu0 %66 }
  0x94   :  { %v69_v18 = vmul.f32 0.00390625, %v67_v17 }
  0x96   :  { %v76_v20 = vperm.slane %v69_v18, %v74_v15 }
  0x98   :  { %v78_v21 = vsel %vm77_vm1, %v76_v20, %v75_v19 }
  0x99   :  { %125 = vmatmul.msk.f32.vlgmr.msra.gmra.mxu0 %vm79_vm2, %v78_v21 }
 0x116   :  { %v102_v22 = vpop.f32.mrf.mxu0 }
 0x117   :  { %105 = vst [vmem:[#allocation7] sm:$0x3] %v102_v22 }
 0x118   :  { %116 = dma.vmem_to_hbm [thread:$0]  %s112_s1, 32, %s114_s23, [#allocation4]  }
 0x119   :  { %207 = dma.done.wait [#allocation4], 32  }
 0x11a   :  { %208 = vsyncadd [#allocation4], 4294967264 }
 0x11b   :  { %121 = vsyncpa [#allocation3], 1 }
 0x11c   :  { %122 = vsyncpa [#allocation6], 1 }
 0x11d   :  { %123 = vsyncpa [#allocation4], 1 }

</bundles_post_ra>
